<compile_context>
chip_gen: v6e
topology: v6e:2x2x1
jax: 0.10.0
libtpu: 0.0.40
codegen_flags: <defaults>
</compile_context>

<pallas_src>
import functools

import jax
import jax.numpy as jnp
from jax.experimental import pallas as pl
from jax.experimental.pallas import tpu as pltpu


_MAX_NATIVE_COLS = 8192                      # use the native last dim if <= this and %128
_FLAT_COLS_CANDIDATES = (1024, 512, 256, 128)
_DEFAULT_TARGET_BLOCK_BYTES = 4 << 20        # ~4 MiB input tile
_MIN_SPLIT_BLOCK_BYTES = 512 << 10           # never shrink tiles below this for TC split
_VMEM_LIMIT_BYTES = 48 << 20                 # headroom for in+out double buffers
_SUPPORTED_ITEMSIZES = (1, 2, 4)


def _sublane_multiple(dtype):
    # 32-bit: (8,128) vreg tile; 16-bit packs 16 sublanes; 8-bit packs 32.
    return {4: 8, 2: 16, 1: 32}.get(jnp.dtype(dtype).itemsize, 8)


def _needs_f32_upcast(dtype):
    return jnp.issubdtype(dtype, jnp.floating) and jnp.dtype(dtype).itemsize < 4


@functools.lru_cache(maxsize=1)
def _num_tensorcores():
    """Best-effort TensorCores-per-device (v7x: 2, v5e/v6e: 1). Perf-only."""
    try:
        info = pltpu.get_tpu_info()
        for name in ("num_cores", "core_count", "num_tensorcores",
                     "tensorcore_count", "cores_per_chip"):
            val = getattr(info, name, None)
            if isinstance(val, int) and 1 <= val <= 8:
                return val
    except Exception:
        pass
    try:
        kind = jax.devices()[0].device_kind.lower()
    except Exception:
        return 1
    if "lite" in kind or "v5e" in kind or "v6e" in kind or "v2" in kind or "v3" in kind:
        return 1
    if "7" in kind or "v4" in kind or "v5p" in kind:
        return 2
    return 1


def _as_2d_view(x):
    """Free (no-copy) row-major 2-D view of x, or (None, None, None) if ragged."""
    total = int(x.size)
    if x.ndim >= 2:
        cols = int(x.shape[-1])
        if cols % 128 == 0 and cols <= _MAX_NATIVE_COLS:
            return x.reshape(-1, cols), total // cols, cols
    for cols in _FLAT_COLS_CANDIDATES:
        if total % cols == 0:
            return x.reshape(-1, cols), total // cols, cols
    return None, None, None


def _choose_block_rows(rows, row_bytes, sub, num_cores, target_block_bytes):
    """Pick block_rows: big tiles, legal (multiple of sublane pack or full dim)."""
    if rows <= sub:
        return rows                                   # single full block
    max_rows = max(sub, (target_block_bytes // row_bytes) // sub * sub)
    block_rows = min(max_rows, rows)
    if num_cores > 1:
        # Guarantee >= 4 steps per core so both TCs get work AND each core's
        # DMA-in / compute / DMA-out actually pipeline — but never shrink tiles
        # below ~512 KiB (per-step overhead would start to dominate again).
        min_steps = 4 * num_cores
        floor_rows = max(sub, (_MIN_SPLIT_BLOCK_BYTES // row_bytes) // sub * sub)
        while block_rows > floor_rows and pl.cdiv(rows, block_rows) < min_steps:
            block_rows = max(floor_rows, max(sub, ((block_rows // 2) // sub) * sub))
    if block_rows >= rows:
        return rows                                   # full dim -> always legal
    return block_rows                                 # multiple of sub by construction


def make_lambda_pallas(lambda_func, *, min_pallas_bytes=1 << 20,
                       target_block_bytes=_DEFAULT_TARGET_BLOCK_BYTES):
    """Pallas-backed version of Lambda(lambda_func) for elementwise lambdas."""

    def apply(x):
        x = jnp.asarray(x)
        in_dtype = x.dtype
        total = int(x.size)
        itemsize = jnp.dtype(in_dtype).itemsize

        # Abstract-eval the lambda: gives the true output dtype and guards
        # shape-changing (non-elementwise) lambdas.
        try:
            out_aval = jax.eval_shape(
                lambda_func, jax.ShapeDtypeStruct(x.shape, in_dtype))
        except Exception:
            return lambda_func(x)
        if not hasattr(out_aval, "shape") or not hasattr(out_aval, "dtype"):
            return lambda_func(x)
        out_dtype = out_aval.dtype
        if tuple(out_aval.shape) != tuple(x.shape):
            # TODO(synk): non-elementwise lambdas (reductions/reshapes/permutes)
            # have no per-tile Pallas equivalent; shape-preserving axis-ops
            # (e.g. softmax) cannot be detected here and must not use this path.
            return lambda_func(x)

        upcast = _needs_f32_upcast(in_dtype)

        def _plain(v):
            vi = v.astype(jnp.float32) if upcast else v
            return lambda_func(vi).astype(out_dtype)

        # Bypass: tiny tensors, unsupported dtypes (XLA fused elementwise is
        # already at HBM roofline with zero wrapper copies).
        if (total == 0
                or total * itemsize < min_pallas_bytes
                or itemsize not in _SUPPORTED_ITEMSIZES
                or jnp.dtype(out_dtype).itemsize not in _SUPPORTED_ITEMSIZES
                or jnp.issubdtype(in_dtype, jnp.bool_)
                or jnp.issubdtype(out_dtype, jnp.bool_)):
            return _plain(x)

        x2d, rows, cols = _as_2d_view(x)
        if x2d is None:
            # TODO(synk): ragged totals (not divisible by 128) could use a
            # block-divisible prefix (kernel) + tiny tail (plain JAX); routed to
            # the plain path instead to avoid full-tensor pad/slice HBM passes.
            return _plain(x)

        sub = max(_sublane_multiple(in_dtype), _sublane_multiple(out_dtype))
        row_bytes = cols * itemsize
        block_rows = _choose_block_rows(rows, row_bytes, sub,
                                        _num_tensorcores(), target_block_bytes)
        grid = (pl.cdiv(rows, block_rows),)   # partial last block handled by masking

        def kernel(x_ref, o_ref):
            v = x_ref[...]
            if upcast:
                # Narrow floats: keep HBM traffic narrow, do math in f32
                # (v5e has no bf16 VPU/EUP; harmless on v6e/v7x — mem-bound).
                v = v.astype(jnp.float32)
            o_ref[...] = lambda_func(v).astype(o_ref.dtype)

        in_bytes = rows * cols * itemsize
        out_bytes = rows * cols * jnp.dtype(out_dtype).itemsize

        out2d = pl.pallas_call(
            kernel,
            out_shape=jax.ShapeDtypeStruct((rows, cols), out_dtype),
            grid=grid,
            in_specs=[pl.BlockSpec((block_rows, cols), lambda i: (i, 0))],
            out_specs=pl.BlockSpec((block_rows, cols), lambda i: (i, 0)),
            compiler_params=pltpu.CompilerParams(
                dimension_semantics=("parallel",),
                vmem_limit_bytes=_VMEM_LIMIT_BYTES),
            cost_estimate=pl.CostEstimate(
                flops=2 * total,
                transcendentals=total,
                bytes_accessed=in_bytes + out_bytes),
        )(x2d)

        return out2d.reshape(x.shape)   # free row-major reshape back

    return apply


if __name__ == "__main__":
    # Example user lambda: swish, written with tanh so the transcendental cost
    # is a single EUP push (sigmoid(x) == 0.5 * (1 + tanh(0.5 * x))).
    lambda_func = lambda x: x * 0.5 * (jnp.tanh(0.5 * x) + 1.0)

    # min_pallas_bytes=0 forces the Pallas path for these small demo tensors
    # (the default bypasses small inputs for performance).
    lambda_pallas = make_lambda_pallas(lambda_func, min_pallas_bytes=0)

    key = jax.random.PRNGKey(0)
    k1, k2, k3, k4 = jax.random.split(key, 4)

    # 1) Standard NCHW f32 input: total divides 1024 -> free reshape to (2, 1024).
    x1 = jax.random.normal(k1, (2, 4, 16, 16), dtype=jnp.float32)
    out1 = jax.block_until_ready(lambda_pallas(x1))
    ref1 = lambda_func(x1)
    assert out1.shape == x1.shape and out1.dtype == x1.dtype
    assert jnp.allclose(out1, ref1, atol=1e-5, rtol=1e-5)

    # 2) Ragged NCHW shape (2*3*7*7 = 294 elems): routed through the plain-JAX
    #    path (no pad/slice HBM passes), numerics identical.
    x2 = jax.random.normal(k2, (2, 3, 7, 7), dtype=jnp.float32)
    out2 = jax.block_until_ready(lambda_pallas(x2))
    assert out2.shape == x2.shape
    assert jnp.allclose(out2, lambda_func(x2), atol=1e-5, rtol=1e-5)

    # 3) bf16 I/O: narrow HBM traffic, f32 math in-kernel, bf16 store.
    x3 = jax.random.normal(k3, (2, 4, 16, 16), dtype=jnp.bfloat16)
    out3 = jax.block_until_ready(lambda_pallas(x3))
    ref3 = lambda_func(x3.astype(jnp.float32)).astype(jnp.bfloat16)
    assert out3.dtype == jnp.bfloat16
    assert jnp.allclose(out3.astype(jnp.float32), ref3.astype(jnp.float32),
                        atol=2e-2, rtol=2e-2)

    # 4) Native 128-lane last dim with a deliberately small target tile to
    #    exercise a multi-step grid and a partial (masked) final block —
    #    still no padding copies anywhere.
    small_tile = make_lambda_pallas(lambda_func, min_pallas_bytes=0,
                                    target_block_bytes=16 * 1024)
    x4 = jax.random.normal(k4, (3, 40, 128), dtype=jnp.float32)
    out4 = jax.block_until_ready(small_tile(x4))
    assert out4.shape == x4.shape
    assert jnp.allclose(out4, lambda_func(x4), atol=1e-5, rtol=1e-5)

    print("KERNEL_OK")
</pallas_src>

<mosaic_0001>
module attributes {stable_mosaic.version = 11 : i64} {
  func.func @kernel(%arg0: i32, %arg1: memref<2x1024xf32, #tpu.memory_space<vmem>>, %arg2: memref<2x1024xf32, #tpu.memory_space<vmem>>) attributes {dimension_semantics = [#tpu.dimension_semantics<parallel>], iteration_bounds = array<i64: 1>, scalar_prefetch = 0 : i64, scratch_operands = 0 : i64, tpu.core_type = #tpu.core_type<tc>, window_params = [{transform_indices = @transform_0, window_bounds = array<i64: 2, 1024>}, {transform_indices = @transform_1, window_bounds = array<i64: 2, 1024>}]} {
    %c0 = arith.constant 0 : index
    %c0_0 = arith.constant 0 : index
    %0 = vector.load %arg1[%c0, %c0_0] : memref<2x1024xf32, #tpu.memory_space<vmem>>, vector<2x1024xf32>
    %cst = arith.constant 5.000000e-01 : f32
    %1 = vector.broadcast %cst : f32 to vector<2x1024xf32>
    %2 = arith.mulf %0, %1 : vector<2x1024xf32>
    %cst_1 = arith.constant 5.000000e-01 : f32
    %3 = vector.broadcast %cst_1 : f32 to vector<2x1024xf32>
    %4 = arith.mulf %3, %0 : vector<2x1024xf32>
    %5 = math.tanh %4 : vector<2x1024xf32>
    %cst_2 = arith.constant 1.000000e+00 : f32
    %6 = vector.broadcast %cst_2 : f32 to vector<2x1024xf32>
    %7 = arith.addf %5, %6 : vector<2x1024xf32>
    %8 = arith.mulf %2, %7 : vector<2x1024xf32>
    %c0_3 = arith.constant 0 : index
    %c0_4 = arith.constant 0 : index
    %9 = vector.load %arg2[%c0_3, %c0_4] : memref<2x1024xf32, #tpu.memory_space<vmem>>, vector<2x1024xf32>
    tpu.vector_store %arg2[%c0_3, %c0_4], %8 {strides = array<i32>} : memref<2x1024xf32, #tpu.memory_space<vmem>>, vector<2x1024xf32>,
    return
  }
  func.func @transform_0(%arg0: i32) -> (i32, i32) {
    %c0_i32 = arith.constant 0 : i32
    %c0_i32_0 = arith.constant 0 : i32
    return %arg0, %c0_i32 : i32, i32
  }
  func.func @transform_1(%arg0: i32) -> (i32, i32) {
    %c0_i32 = arith.constant 0 : i32
    %c0_i32_0 = arith.constant 0 : i32
    return %arg0, %c0_i32 : i32, i32
  }
}

</mosaic_0001>

<bundles_post_ra>
// kernel: tpu_custom_call.1
= control target key start
LH: loop header
LB: loop body
LE: loop exit
PB: predicated region body
PF: predicated region fallthrough
CT: control target
= control target key end

     0   :  { %6 = vsyncpa [#allocation3], 0  ;;  %s116_s0 = inlined_call_operand.hbm [shape: f32[2,1024], index: 0, kind: input, shape index: {}]   ;;  %s117_s1 = inlined_call_operand.hbm [shape: f32[2,1024], index: 1, kind: output, shape index: {}]  }
   0x1   :  { %7 = vsyncpa [#allocation4], 0  ;;  %s98_s6 = smov [#allocation2]  }
   0x2   :  { %s14_s7 = sshll.u32 %s98_s6, 4  ;;  %s15_s7 = int_to_ptr.vmem [resolvable:$true] %s14_s7 }
   0x3   :  { %s62_s8 = scalar_lea.vmem %s15_s7, 256  ;;  %p67_p1 = scmp.lt.s32.totalorder %s15_s7, %s15_s7 }
   0x4   :  { %p63_p0 = scmp.ne.s32.totalorder %s15_s7, %s62_s8  ;;  %p68_p2 = scmp.lt.s32.totalorder %s62_s8, %s62_s8 }
   0x6   :  { %p69_p3 = por %p68_p2, %p67_p1 }
   0x8   :  { %p70_p4 = pnand %p69_p3, %p63_p0 }
   0xa   :  { %73 = shalt.err (!%p70_p4)
}
   0xb   :  { %17 = dma.hbm_to_vmem [thread:$0]  %s116_s0, 256, %s15_s7, [#allocation3]  }
   0xc   :  { %94 = dma.done.wait [#allocation3], 256  }
   0xd   :  { %95 = vsyncadd [#allocation3], 4294967040  ;;  %v21_v0 = vld [vmem:[#allocation2] sm:$0xff]  ;;  %v22_v1 = vld [vmem:[#allocation2 + $0x8] sm:$0xff]  ;;  %s99_s11 = smov [#allocation5]  }
   0xe   :  { %v23_v2 = vmul.f32 0.5, %v21_v0  ;;  %v24_v3 = vmul.f32 0.5, %v22_v1  ;;  %s39_s12 = sshll.u32 %s99_s11, 4  ;;  %s40_s12 = int_to_ptr.vmem [resolvable:$true] %s39_s12 }
   0xf   :  { %s74_s0 = scalar_lea.vmem %s40_s12, 256  ;;  %p79_p6 = scmp.lt.s32.totalorder %s40_s12, %s40_s12 }
  0x10   :  { %50 = vtanh.f32 %v23_v2  ;;  %p75_p5 = scmp.ne.s32.totalorder %s40_s12, %s74_s0  ;;  %p80_p7 = scmp.lt.s32.totalorder %s74_s0, %s74_s0 }
  0x11   :  { %52 = vtanh.f32 %v24_v3 }
  0x12   :  { %p81_p8 = por %p80_p7, %p79_p6 }
  0x14   :  { %p82_p9 = pnand %p81_p8, %p75_p5 }
  0x1d   :  { %v51_v4 = vpop.eup %50 }
  0x1e   :  { %v53_v5 = vpop.eup %52  ;;  %v27_v6 = vadd.f32 1.0, %v51_v4 }
  0x1f   :  { %v28_v7 = vadd.f32 1.0, %v53_v5 }
  0x20   :  { %v29_v8 = vmul.f32 %v27_v6, %v23_v2 }
  0x21   :  { %v30_v9 = vmul.f32 %v28_v7, %v24_v3 }
  0x22   :  { %31 = vst [vmem:[#allocation5] sm:$0xff] %v29_v8 }
  0x23   :  { %32 = vst [vmem:[#allocation5 + $0x8] sm:$0xff] %v30_v9 }
  0x24   :  { %85 = shalt.err (!%p82_p9)
}
  0x25   :  { %42 = dma.vmem_to_hbm [thread:$0]  %s40_s12, 256, %s117_s1, [#allocation4]  }
  0x26   :  { %96 = dma.done.wait [#allocation4], 256  }
  0x27   :  { %97 = vsyncadd [#allocation4], 4294967040 }
  0x28   :  { %46 = vsyncpa [#allocation3], 1 }
  0x29   :  { %47 = vsyncpa [#allocation4], 1 }

</bundles_post_ra>
